<compile_context>
chip_gen: v7x
topology: tpu7x:2x2x1
jax: 0.10.0
libtpu: 0.0.40
codegen_flags: <defaults>
</compile_context>

<pallas_src>
import functools

import jax
import jax.numpy as jnp
from jax.experimental import pallas as pl
from jax.experimental.pallas import tpu as pltpu

_INV_SQRT2 = 0.7071067811865476
_SQRT_2_OVER_PI = 0.7978845608028654


def _gelu(h, approx):
    if approx:
        # tanh-approx GELU: routes through the EUP (separate VLIW slot) instead of
        # a long VALU erf polynomial.  Use on v6e/v7x when accuracy contract allows.
        return 0.5 * h * (1.0 + jnp.tanh(_SQRT_2_OVER_PI * (h + 0.044715 * h * h * h)))
    # Exact GELU: matches torch.nn.GELU() default.
    return 0.5 * h * (1.0 + jax.lax.erf(h * _INV_SQRT2))


def _residual_layernorm(y_f32, x_ref, affine_ref, o_ref):
    # y_f32: (tm, D) f32 linear2 output (bias2 not yet added).
    # affine_ref: (3, D) f32 rows = [b2, gamma, beta].
    # TODO(synk): dropout is identity (inference / eval mode); no RNG mask.
    aff = affine_ref[...]
    z = y_f32 + aff[0:1, :] + x_ref[...].astype(jnp.float32)
    mean = jnp.mean(z, axis=-1, keepdims=True)
    zc = z - mean
    var = jnp.mean(zc * zc, axis=-1, keepdims=True)
    inv = jax.lax.rsqrt(var + 1e-5)
    o_ref[...] = (zc * inv * aff[1:2, :] + aff[2:3, :]).astype(o_ref.dtype)


# ---------------------------------------------------------------------------
# Primary kernel: full weights VMEM-resident, grid over row tiles only.
# ---------------------------------------------------------------------------
def _ffn_resident_kernel(x_ref, w1_ref, b1_ref, w2_ref, affine_ref, o_ref, *,
                         approx_gelu):
    xc = x_ref[...].astype(w1_ref.dtype)
    h = jnp.dot(xc, w1_ref[...], preferred_element_type=jnp.float32)
    h = _gelu(h + b1_ref[...], approx_gelu)
    y = jnp.dot(h.astype(w2_ref.dtype), w2_ref[...],
                preferred_element_type=jnp.float32)
    _residual_layernorm(y, x_ref, affine_ref, o_ref)


# ---------------------------------------------------------------------------
# Fallback kernel: hidden (4*D) axis tiled with an f32 VMEM accumulator.
# Only used when the resident-weight footprint exceeds the VMEM budget.
# ---------------------------------------------------------------------------
def _ffn_tiled_kernel(x_ref, w1_ref, b1_ref, w2_ref, affine_ref, o_ref,
                      acc_ref, xc_ref, *, approx_gelu):
    h_idx = pl.program_id(1)

    @pl.when(h_idx == 0)
    def _init():
        acc_ref[...] = jnp.zeros_like(acc_ref)
        # Hoisted per-row-tile cast: reuse across all hidden chunks.
        xc_ref[...] = x_ref[...].astype(xc_ref.dtype)

    h = jnp.dot(xc_ref[...], w1_ref[...], preferred_element_type=jnp.float32)
    h = _gelu(h + b1_ref[...], approx_gelu)
    acc_ref[...] += jnp.dot(h.astype(w2_ref.dtype), w2_ref[...],
                            preferred_element_type=jnp.float32)

    @pl.when(h_idx == pl.num_programs(1) - 1)
    def _epilogue():
        _residual_layernorm(acc_ref[...], x_ref, affine_ref, o_ref)


# ---------------------------------------------------------------------------
# Tiling / VMEM planning helpers
# ---------------------------------------------------------------------------
def _round_down(v, m):
    return max(m, (v // m) * m)


def _pick_row_block(n, requested, x_itemsize):
    align = 16 if x_itemsize < 4 else 8        # bf16 packs 16 rows per vreg
    if requested is None:
        requested = 512
    if requested >= n:
        # Full extent is legal, but keep >= 2 row blocks when possible so the
        # "parallel" row axis can be sharded across v7x's two TensorCores.
        if n >= 2 * align:
            return _round_down(n // 2, align)
        return n
    return _round_down(requested, align)


def _pick_h_block(h, requested):
    if requested is None:
        requested = 512
    requested = min(requested, h)
    requested = _round_down(requested, 128)    # lane-aligned K for the 2nd matmul
    if h % requested != 0:
        return h
    return requested


def _vmem_budget_bytes():
    try:
        cap = pltpu.get_tpu_info().vmem_capacity_bytes
    except Exception:
        cap = 64 * 1024 * 1024                 # conservative (v7x per-core VMEM)
    return int(cap * 0.85)


def _resident_vmem_bytes(tm, d, hdim, xbytes, cbytes):
    # TODO(synk): on v7x (64 MiB VMEM) mark grid-invariant weight BlockSpecs with
    # pipeline_mode=pl.Buffered(1) to drop the redundant second weight buffer.
    return (4 * tm * d * xbytes            # x + out tiles, double-buffered
            + 4 * d * hdim * cbytes        # W1 + W2 (assume double-buffered)
            + 2 * 8 * hdim * 4             # b1 (sublane-padded)
            + 2 * 8 * d * 4                # (3, D) affine (sublane-padded)
            + tm * hdim * (4 + cbytes)     # GELU intermediate + bf16 copy
            + tm * d * (4 + cbytes))       # z / cast headroom


def _tiled_vmem_bytes(tm, th, d, xbytes, cbytes):
    return (4 * tm * d * xbytes
            + 4 * d * th * cbytes          # W1 + W2 chunks, double-buffered
            + 2 * 8 * th * 4
            + 2 * 8 * d * 4
            + tm * th * (4 + cbytes)
            + tm * d * (4 + cbytes)        # acc + xc scratches
            + tm * d * 4)


# ---------------------------------------------------------------------------
# Wrapper
# ---------------------------------------------------------------------------
@functools.partial(jax.jit, static_argnames=("block_rows", "block_h",
                                              "compute_dtype", "approx_gelu"))
def bert_feed_forward(x, w1, b1, w2, b2, gamma, beta, *,
                      block_rows=None, block_h=None,
                      compute_dtype=jnp.bfloat16, approx_gelu=False):
    B, T, D = x.shape
    H = w1.shape[1]              # 4 * D
    N = B * T

    xbytes = jnp.dtype(x.dtype).itemsize
    cbytes = jnp.dtype(compute_dtype).itemsize
    budget = _vmem_budget_bytes()

    tm = _pick_row_block(N, block_rows, xbytes)
    force_tiled = block_h is not None and block_h < H

    resident_est = _resident_vmem_bytes(tm, D, H, xbytes, cbytes)
    if not force_tiled:
        # Shrink row tile until resident weights + tiles fit the VMEM budget.
        while resident_est > budget and tm > 64:
            tm = max(64, _round_down(tm // 2, 16 if xbytes < 4 else 8))
            resident_est = _resident_vmem_bytes(tm, D, H, xbytes, cbytes)
    use_resident = (not force_tiled) and resident_est <= budget

    x2 = x.reshape(N, D)
    w1c = w1.astype(compute_dtype)
    w2c = w2.astype(compute_dtype)
    b1_2 = b1.reshape(1, H).astype(jnp.float32)
    affine = jnp.stack([b2, gamma, beta]).astype(jnp.float32)   # (3, D)

    n_row_tiles = pl.cdiv(N, tm)
    weight_read_mult = 1 if use_resident else n_row_tiles
    cost = pl.CostEstimate(
        flops=4 * N * D * H,                                    # two matmuls
        transcendentals=(N * H) if approx_gelu else 0,          # erf = VALU poly
        bytes_accessed=(2 * N * D * xbytes
                        + 2 * weight_read_mult * D * H * cbytes
                        + (H + 3 * D) * 4))

    if use_resident:
        kernel = functools.partial(_ffn_resident_kernel, approx_gelu=approx_gelu)
        vmem_limit = int(min(max(int(resident_est * 1.2), 32 * 1024 * 1024), budget))
        out = pl.pallas_call(
            kernel,
            out_shape=jax.ShapeDtypeStruct((N, D), x.dtype),
            grid_spec=pltpu.PrefetchScalarGridSpec(
                num_scalar_prefetch=0,
                grid=(n_row_tiles,),
                in_specs=[
                    pl.BlockSpec((tm, D), lambda i: (i, 0)),   # x rows
                    pl.BlockSpec((D, H), lambda i: (0, 0)),    # W1 (grid-invariant)
                    pl.BlockSpec((1, H), lambda i: (0, 0)),    # b1 (grid-invariant)
                    pl.BlockSpec((H, D), lambda i: (0, 0)),    # W2 (grid-invariant)
                    pl.BlockSpec((3, D), lambda i: (0, 0)),    # [b2, gamma, beta]
                ],
                out_specs=pl.BlockSpec((tm, D), lambda i: (i, 0)),
            ),
            compiler_params=pltpu.CompilerParams(
                dimension_semantics=("parallel",),
                vmem_limit_bytes=vmem_limit),
            cost_estimate=cost,
        )(x2, w1c, b1_2, w2c, affine)
    else:
        th = _pick_h_block(H, block_h)
        tiled_est = _tiled_vmem_bytes(tm, th, D, xbytes, cbytes)
        vmem_limit = int(min(max(int(tiled_est * 1.2), 32 * 1024 * 1024), budget))
        kernel = functools.partial(_ffn_tiled_kernel, approx_gelu=approx_gelu)
        out = pl.pallas_call(
            kernel,
            out_shape=jax.ShapeDtypeStruct((N, D), x.dtype),
            grid_spec=pltpu.PrefetchScalarGridSpec(
                num_scalar_prefetch=0,
                grid=(n_row_tiles, H // th),
                in_specs=[
                    pl.BlockSpec((tm, D), lambda i, h: (i, 0)),   # x rows (resident over h)
                    pl.BlockSpec((D, th), lambda i, h: (0, h)),   # W1 hidden chunk
                    pl.BlockSpec((1, th), lambda i, h: (0, h)),   # b1 hidden chunk
                    pl.BlockSpec((th, D), lambda i, h: (h, 0)),   # W2 hidden chunk
                    pl.BlockSpec((3, D), lambda i, h: (0, 0)),    # [b2, gamma, beta]
                ],
                out_specs=pl.BlockSpec((tm, D), lambda i, h: (i, 0)),
                scratch_shapes=[pltpu.VMEM((tm, D), jnp.float32),   # f32 accumulator
                                pltpu.VMEM((tm, D), compute_dtype)],  # hoisted x cast
            ),
            compiler_params=pltpu.CompilerParams(
                dimension_semantics=("parallel", "arbitrary"),
                vmem_limit_bytes=vmem_limit),
            cost_estimate=cost,
        )(x2, w1c, b1_2, w2c, affine)

    return out.reshape(B, T, D)


if __name__ == "__main__":
    # Small shapes consistent with the module (D lane-aligned).
    B, T, D = 2, 16, 128          # batch, sequence (<= Tmax), embedding_dim
    H = 4 * D

    key = jax.random.PRNGKey(0)
    kx, k1, k2, k3, k4 = jax.random.split(key, 5)

    x = jax.random.normal(kx, (B, T, D), dtype=jnp.float32)
    w1 = jax.random.normal(k1, (D, H), dtype=jnp.float32) * 0.02   # linear1 weight (transposed vs torch)
    b1 = jax.random.normal(k2, (H,), dtype=jnp.float32) * 0.02
    w2 = jax.random.normal(k3, (H, D), dtype=jnp.float32) * 0.02   # linear2 weight (transposed vs torch)
    b2 = jax.random.normal(k4, (D,), dtype=jnp.float32) * 0.02
    gamma = jnp.ones((D,), dtype=jnp.float32)                      # LayerNorm weight
    beta = jnp.zeros((D,), dtype=jnp.float32)                      # LayerNorm bias

    # Reference (plain JAX) using the same bf16-quantized matmul operands the
    # kernel sees; GELU / residual / LayerNorm in f32.
    bf = jnp.bfloat16
    xf = x.reshape(-1, D)
    w1q = w1.astype(bf).astype(jnp.float32)
    w2q = w2.astype(bf).astype(jnp.float32)
    h = xf.astype(bf).astype(jnp.float32) @ w1q + b1
    h = 0.5 * h * (1.0 + jax.lax.erf(h / jnp.sqrt(2.0)))
    y = h.astype(bf).astype(jnp.float32) @ w2q + b2
    z = y + xf
    mu = z.mean(-1, keepdims=True)
    var = ((z - mu) ** 2).mean(-1, keepdims=True)
    ref = ((z - mu) / jnp.sqrt(var + 1e-5)) * gamma + beta
    ref = ref.reshape(B, T, D)

    # 1) Default path: weights fully VMEM-resident, grid over row tiles only.
    out_res = bert_feed_forward(x, w1, b1, w2, b2, gamma, beta)
    out_res = jax.block_until_ready(out_res)
    assert out_res.shape == (B, T, D)
    err_res = jnp.max(jnp.abs(out_res - ref))
    assert jnp.allclose(out_res, ref, atol=5e-3, rtol=5e-3), \
        f"resident-path mismatch vs reference: max abs err = {err_res}"

    # 2) Fallback path: explicit hidden tiling exercises the accumulator grid,
    #    init / epilogue gating and the hoisted-cast scratch.
    out_tiled = bert_feed_forward(x, w1, b1, w2, b2, gamma, beta,
                                  block_rows=16, block_h=128)
    out_tiled = jax.block_until_ready(out_tiled)
    err_tiled = jnp.max(jnp.abs(out_tiled - ref))
    assert jnp.allclose(out_tiled, ref, atol=5e-3, rtol=5e-3), \
        f"tiled-path mismatch vs reference: max abs err = {err_tiled}"

    print("KERNEL_OK")
</pallas_src>

<mosaic_0001>
module attributes {stable_mosaic.version = 11 : i64} {
  func.func @_ffn_resident_kernel(%arg0: i32, %arg1: memref<16x128xf32, #tpu.memory_space<vmem>>, %arg2: memref<128x512xbf16, #tpu.memory_space<vmem>>, %arg3: memref<1x512xf32, #tpu.memory_space<vmem>>, %arg4: memref<512x128xbf16, #tpu.memory_space<vmem>>, %arg5: memref<3x128xf32, #tpu.memory_space<vmem>>, %arg6: memref<16x128xf32, #tpu.memory_space<vmem>>) attributes {dimension_semantics = [#tpu.dimension_semantics<parallel>], iteration_bounds = array<i64: 2>, scalar_prefetch = 0 : i64, scratch_operands = 0 : i64, tpu.core_type = #tpu.core_type<tc>, window_params = [{transform_indices = @transform_0, window_bounds = array<i64: 16, 128>}, {pipeline_mode = #tpu.pipeline_mode<synchronous>, transform_indices = @transform_1, window_bounds = array<i64: 128, 512>}, {pipeline_mode = #tpu.pipeline_mode<synchronous>, transform_indices = @transform_2, window_bounds = array<i64: 1, 512>}, {pipeline_mode = #tpu.pipeline_mode<synchronous>, transform_indices = @transform_3, window_bounds = array<i64: 512, 128>}, {pipeline_mode = #tpu.pipeline_mode<synchronous>, transform_indices = @transform_4, window_bounds = array<i64: 3, 128>}, {transform_indices = @transform_5, window_bounds = array<i64: 16, 128>}]} {
    %c0 = arith.constant 0 : index
    %c0_0 = arith.constant 0 : index
    %0 = vector.load %arg1[%c0, %c0_0] : memref<16x128xf32, #tpu.memory_space<vmem>>, vector<16x128xf32>
    %1 = arith.truncf %0 : vector<16x128xf32> to vector<16x128xbf16>
    %c0_1 = arith.constant 0 : index
    %c0_2 = arith.constant 0 : index
    %2 = vector.load %arg2[%c0_1, %c0_2] : memref<128x512xbf16, #tpu.memory_space<vmem>>, vector<128x512xbf16>
    %cst = arith.constant dense<0.000000e+00> : vector<16x512xf32>
    %3 = tpu.matmul %1, %2, %cst {dimension_numbers = #tpu.dot_dimension_numbers<[1], [0], [0], [1], [0, 0, 1, 1], [], []>} : vector<16x128xbf16>, vector<128x512xbf16>, vector<16x512xf32> -> vector<16x512xf32>
    %c0_3 = arith.constant 0 : index
    %c0_4 = arith.constant 0 : index
    %4 = vector.load %arg3[%c0_3, %c0_4] : memref<1x512xf32, #tpu.memory_space<vmem>>, vector<1x512xf32>
    %5 = vector.broadcast %4 : vector<1x512xf32> to vector<16x512xf32>
    %6 = arith.addf %3, %5 : vector<16x512xf32>
    %cst_5 = arith.constant 5.000000e-01 : f32
    %7 = vector.broadcast %cst_5 : f32 to vector<16x512xf32>
    %8 = arith.mulf %7, %6 : vector<16x512xf32>
    %cst_6 = arith.constant 0.707106769 : f32
    %9 = vector.broadcast %cst_6 : f32 to vector<16x512xf32>
    %10 = arith.mulf %6, %9 : vector<16x512xf32>
    %11 = math.erf %10 : vector<16x512xf32>
    %cst_7 = arith.constant 1.000000e+00 : f32
    %12 = vector.broadcast %cst_7 : f32 to vector<16x512xf32>
    %13 = arith.addf %12, %11 : vector<16x512xf32>
    %14 = arith.mulf %8, %13 : vector<16x512xf32>
    %15 = arith.truncf %14 : vector<16x512xf32> to vector<16x512xbf16>
    %c0_8 = arith.constant 0 : index
    %c0_9 = arith.constant 0 : index
    %16 = vector.load %arg4[%c0_8, %c0_9] : memref<512x128xbf16, #tpu.memory_space<vmem>>, vector<512x128xbf16>
    %cst_10 = arith.constant dense<0.000000e+00> : vector<16x128xf32>
    %17 = tpu.matmul %15, %16, %cst_10 {dimension_numbers = #tpu.dot_dimension_numbers<[1], [0], [0], [1], [0, 0, 1, 1], [], []>} : vector<16x512xbf16>, vector<512x128xbf16>, vector<16x128xf32> -> vector<16x128xf32>
    %c0_11 = arith.constant 0 : index
    %c0_12 = arith.constant 0 : index
    %18 = vector.load %arg5[%c0_11, %c0_12] : memref<3x128xf32, #tpu.memory_space<vmem>>, vector<3x128xf32>
    %19 = vector.extract_strided_slice %18 {offsets = [0, 0], sizes = [1, 128], strides = [1, 1]} : vector<3x128xf32> to vector<1x128xf32>
    %20 = vector.broadcast %19 : vector<1x128xf32> to vector<16x128xf32>
    %21 = arith.addf %17, %20 : vector<16x128xf32>
    %c0_13 = arith.constant 0 : index
    %c0_14 = arith.constant 0 : index
    %22 = vector.load %arg1[%c0_13, %c0_14] : memref<16x128xf32, #tpu.memory_space<vmem>>, vector<16x128xf32>
    %23 = arith.addf %21, %22 : vector<16x128xf32>
    %cst_15 = arith.constant dense<0.000000e+00> : vector<16xf32>
    %24 = vector.multi_reduction <add>, %23, %cst_15 [1] : vector<16x128xf32> to vector<16xf32>
    %25 = vector.shape_cast %24 : vector<16xf32> to vector<16x1xf32>
    %cst_16 = arith.constant 1.280000e+02 : f32
    %26 = vector.broadcast %cst_16 : f32 to vector<16x1xf32>
    %27 = arith.divf %25, %26 : vector<16x1xf32>
    %28 = vector.broadcast %27 : vector<16x1xf32> to vector<16x128xf32>
    %29 = arith.subf %23, %28 : vector<16x128xf32>
    %30 = arith.mulf %29, %29 : vector<16x128xf32>
    %cst_17 = arith.constant dense<0.000000e+00> : vector<16xf32>
    %31 = vector.multi_reduction <add>, %30, %cst_17 [1] : vector<16x128xf32> to vector<16xf32>
    %32 = vector.shape_cast %31 : vector<16xf32> to vector<16x1xf32>
    %cst_18 = arith.constant 1.280000e+02 : f32
    %33 = vector.broadcast %cst_18 : f32 to vector<16x1xf32>
    %34 = arith.divf %32, %33 : vector<16x1xf32>
    %cst_19 = arith.constant 9.99999974E-6 : f32
    %35 = vector.broadcast %cst_19 : f32 to vector<16x1xf32>
    %36 = arith.addf %34, %35 : vector<16x1xf32>
    %37 = math.rsqrt %36 : vector<16x1xf32>
    %38 = vector.broadcast %37 : vector<16x1xf32> to vector<16x128xf32>
    %39 = arith.mulf %29, %38 : vector<16x128xf32>
    %40 = vector.extract_strided_slice %18 {offsets = [1, 0], sizes = [1, 128], strides = [1, 1]} : vector<3x128xf32> to vector<1x128xf32>
    %41 = vector.broadcast %40 : vector<1x128xf32> to vector<16x128xf32>
    %42 = arith.mulf %39, %41 : vector<16x128xf32>
    %43 = vector.extract_strided_slice %18 {offsets = [2, 0], sizes = [1, 128], strides = [1, 1]} : vector<3x128xf32> to vector<1x128xf32>
    %44 = vector.broadcast %43 : vector<1x128xf32> to vector<16x128xf32>
    %45 = arith.addf %42, %44 : vector<16x128xf32>
    %c0_20 = arith.constant 0 : index
    %c0_21 = arith.constant 0 : index
    %46 = vector.load %arg6[%c0_20, %c0_21] : memref<16x128xf32, #tpu.memory_space<vmem>>, vector<16x128xf32>
    tpu.vector_store %arg6[%c0_20, %c0_21], %45 {strides = array<i32>} : memref<16x128xf32, #tpu.memory_space<vmem>>, vector<16x128xf32>,
    return
  }
  func.func @transform_0(%arg0: i32) -> (i32, i32) {
    %c0_i32 = arith.constant 0 : i32
    %c0_i32_0 = arith.constant 0 : i32
    return %arg0, %c0_i32 : i32, i32
  }
  func.func @transform_1(%arg0: i32) -> (i32, i32) {
    %c0_i32 = arith.constant 0 : i32
    %c0_i32_0 = arith.constant 0 : i32
    %c0_i32_1 = arith.constant 0 : i32
    return %c0_i32, %c0_i32_0 : i32, i32
  }
  func.func @transform_2(%arg0: i32) -> (i32, i32) {
    %c0_i32 = arith.constant 0 : i32
    %c0_i32_0 = arith.constant 0 : i32
    %c0_i32_1 = arith.constant 0 : i32
    return %c0_i32, %c0_i32_0 : i32, i32
  }
  func.func @transform_3(%arg0: i32) -> (i32, i32) {
    %c0_i32 = arith.constant 0 : i32
    %c0_i32_0 = arith.constant 0 : i32
    %c0_i32_1 = arith.constant 0 : i32
    return %c0_i32, %c0_i32_0 : i32, i32
  }
  func.func @transform_4(%arg0: i32) -> (i32, i32) {
    %c0_i32 = arith.constant 0 : i32
    %c0_i32_0 = arith.constant 0 : i32
    %c0_i32_1 = arith.constant 0 : i32
    return %c0_i32, %c0_i32_0 : i32, i32
  }
  func.func @transform_5(%arg0: i32) -> (i32, i32) {
    %c0_i32 = arith.constant 0 : i32
    %c0_i32_0 = arith.constant 0 : i32
    return %arg0, %c0_i32 : i32, i32
  }
}

</mosaic_0001>

<bundles_post_ra>
// kernel: bert_feed_forward.1
= control target key start
LH: loop header
LB: loop body
LE: loop exit
PB: predicated region body
PF: predicated region fallthrough
CT: control target
= control target key end

     0   :  { %10 = vsyncpa [#allocation3], 0  ;;  %s1719_s0 = inlined_call_operand.vmem [shape: f32[32,128], index: 0, kind: input, shape index: {}]   ;;  %s1720_s1 = inlined_call_operand.vmem [shape: bf16[128,512], index: 1, kind: input, shape index: {}]   ;;  %s1721_s2 = inlined_call_operand.vmem [shape: f32[1,512], index: 2, kind: input, shape index: {}]   ;;  %s1722_s3 = inlined_call_operand.vmem [shape: bf16[512,128], index: 3, kind: input, shape index: {}]   ;;  %s1723_s4 = inlined_call_operand.vmem [shape: f32[3,128], index: 4, kind: input, shape index: {}]   ;;  %s1724_s5 = inlined_call_operand.hbm [shape: f32[32,128], index: 5, kind: output, shape index: {}]  }
   0x1   :  { %12 = vsyncpa [#allocation3 + $0x1], 0  ;;  %s1393_s18 = smov 0   ;;  %s1395_s19 = smov 0  }
   0x2   :  { %s1397_s20 = smov 0   ;;  %s1399_s21 = smov 0  }
   0x3 LB: > { %s1414_s22 = sadd.s32 4294967295, %s1357_s21   ;;  %s1032_s23 = sadd.s32 4294967294, %s1357_s21   ;;  %s1357_s21 = sphi %s1399_s21, %s1730_s21   ;;  %s1353_s20 = sphi %s1397_s20, %s1729_s20   ;;  %s1349_s19 = sphi %s1395_s19, %s1728_s19   ;;  %s1345_s18 = sphi %s1393_s18, %s1727_s18  }
   0x4   : > { %s1418_s24 = sadd.s32 1, %s1357_s21   ;;  %s135_s25 = sadd.s32 1, %s1353_s20 }
   0x5   : > { %s132_s26 = ssub.s32 %s1357_s21, %s1418_s24  ;;  %p145_p0 = scmp.ne.s32.totalorder %s1353_s20, %s1349_s19 }
   0x6   : > { %p133_p1 = scmp.eq.s32.totalorder %s132_s26, 0  ;;  %p146_p2 = scmp.eq.s32.totalorder %s1414_s22, 1 }
   0x7   : > { %p151_p3 = scmp.ne.s32.totalorder %s1349_s19, %s1345_s18  ;;  %p152_p4 = scmp.eq.s32.totalorder %s1032_s23, 1 }
   0x8   : > { %s1429_s27 = scalar_select %p133_p1, %s1353_s20, %s135_s25  }
   0x9   : > { %p1431_p5 = por %p146_p2, %p145_p0  ;;  %p1435_p6 = por %p152_p4, %p151_p3 }
   0xa   : > { %p1035_p7 = scmp.ge.s32.totalorder %s1357_s21, 1  ;;  %p191_p8 = scmp.lt.s32.totalorder %s1357_s21, 3 }
   0xc   : > { %p192_p9 = pnand %p1035_p7, %p191_p8 }
   0xd   : > { %v1195_v0 = vld [vmem:[%s1720_s1 + $0x4] ss:$16 sps:$4 sm:$0xff] (!%p192_p9)   ;;  %v1197_v1 = vld [vmem:[%s1720_s1 + $0xc] ss:$16 sps:$4 sm:$0xff] (!%p192_p9)   ;;  %v1359_v2 = vmov (!%p192_p9), 0   ;;  %s1037_s17 = sshll.u32 (!%p192_p9), %s1414_s22, 1 }
   0xe   : > { %195 = sbr.rel (%p192_p9) target bundleno = 838 (0x346), region = 40  ;;  %476 = vmatprep.mubr.bf16.mxu0 (!%p192_p9), %v1359_v2  ;;  %519 = vmatprep.mubr.bf16.mxu1 (!%p192_p9), %v1359_v2  ;;  %v1199_v3 = vld [vmem:[%s1720_s1] ss:$16 sps:$4 sm:$0xff] (!%p192_p9)   ;;  %v1200_v4 = vld [vmem:[%s1720_s1 + $0x8] ss:$16 sps:$4 sm:$0xff] (!%p192_p9)   ;;  %p220_p10 = scmp.lt.s32.totalorder (!%p192_p9), %s1037_s17, 3 }
   0xf   : > { %444 = vmatprep.subr.bf16.mxu0 (!%p192_p9), %v1195_v0  ;;  %487 = vmatprep.subr.bf16.mxu1 (!%p192_p9), %v1197_v1  ;;  %v1201_v5 = vld [vmem:[%s1720_s1 + $0x24] ss:$16 sps:$4 sm:$0xff] (!%p192_p9)   ;;  %v1203_v6 = vld [vmem:[%s1720_s1 + $0x2c] ss:$16 sps:$4 sm:$0xff] (!%p192_p9)   ;;  %v1205_v7 = vld [vmem:[%s1720_s1 + $0x20] ss:$16 sps:$4 sm:$0xff] (!%p192_p9)  }
  0x10   : > { %445 = vmatpush1.bf16.msra.mxu0 (!%p192_p9), %v1199_v3  ;;  %488 = vmatpush1.bf16.msra.mxu1 (!%p192_p9), %v1200_v4  ;;  %v1206_v8 = vld [vmem:[%s1720_s1 + $0x28] ss:$16 sps:$4 sm:$0xff] (!%p192_p9)   ;;  %v1207_v9 = vld [vmem:[%s1720_s1 + $0x44] ss:$16 sps:$4 sm:$0xff] (!%p192_p9)   ;;  %v1209_v10 = vld [vmem:[%s1720_s1 + $0x4c] ss:$16 sps:$4 sm:$0xff] (!%p192_p9)   ;;  %v264_v4 = vlaneseq (!%p192_p9) }
  0x11   : > { %446 = vmatprep.subr.bf16.mxu0 (!%p192_p9), %v1201_v5  ;;  %489 = vmatprep.subr.bf16.mxu1 (!%p192_p9), %v1203_v6  ;;  %v1211_v11 = vld [vmem:[%s1720_s1 + $0x40] ss:$16 sps:$4 sm:$0xff] (!%p192_p9)   ;;  %v1212_v12 = vld [vmem:[%s1720_s1 + $0x48] ss:$16 sps:$4 sm:$0xff] (!%p192_p9)   ;;  %v1213_v13 = vld [vmem:[%s1720_s1 + $0x64] ss:$16 sps:$4 sm:$0xff] (!%p192_p9)  }
  0x12   : > { %v1215_v14 = vld [vmem:[%s1720_s1 + $0x6c] ss:$16 sps:$4 sm:$0xff] (!%p192_p9)   ;;  %v1217_v15 = vld [vmem:[%s1720_s1 + $0x60] ss:$16 sps:$4 sm:$0xff] (!%p192_p9)   ;;  %v1218_v16 = vld [vmem:[%s1720_s1 + $0x68] ss:$16 sps:$4 sm:$0xff] (!%p192_p9)  }
  0x13   : > { %v1219_v17 = vld [vmem:[%s1720_s1 + $0x84] ss:$16 sps:$4 sm:$0xff] (!%p192_p9)   ;;  %v1221_v18 = vld [vmem:[%s1720_s1 + $0x8c] ss:$16 sps:$4 sm:$0xff] (!%p192_p9)   ;;  %v1223_v19 = vld [vmem:[%s1720_s1 + $0x80] ss:$16 sps:$4 sm:$0xff] (!%p192_p9)  }
  0x14   : > { %447 = vmatpush1.bf16.msra.mxu0 (!%p192_p9), %v1205_v7  ;;  %490 = vmatpush1.bf16.msra.mxu1 (!%p192_p9), %v1206_v8  ;;  %v1224_v20 = vld [vmem:[%s1720_s1 + $0x88] ss:$16 sps:$4 sm:$0xff] (!%p192_p9)   ;;  %v1225_v21 = vld [vmem:[%s1720_s1 + $0xa4] ss:$16 sps:$4 sm:$0xff] (!%p192_p9)   ;;  %v1227_v22 = vld [vmem:[%s1720_s1 + $0xac] ss:$16 sps:$4 sm:$0xff] (!%p192_p9)  }
  0x15   : > { %448 = vmatprep.subr.bf16.mxu0 %v1207_v9  ;;  %491 = vmatprep.subr.bf16.mxu1 %v1209_v10  ;;  %s1732_s17 = smov (!%p220_p10, %s1037_s17), 3  ;;  %v1229_v23 = vld [vmem:[%s1720_s1 + $0xa0] ss:$16 sps:$4 sm:$0xff]   ;;  %v1230_v24 = vld [vmem:[%s1720_s1 + $0xa8] ss:$16 sps:$4 sm:$0xff]   ;;  %v1643_v5 = vshrl.u32 %v264_v4, 7 }
  0x16   : > { %s1038_s7 = sshll.u32 %s1732_s17, 3  ;;  %v1231_v25 = vld [vmem:[%s1720_s1 + $0xc4] ss:$16 sps:$4 sm:$0xff]   ;;  %v1233_v26 = vld [vmem:[%s1720_s1 + $0xcc] ss:$16 sps:$4 sm:$0xff]   ;;  %s216_s15 = sand.u32 1, %s1349_s19  }
  0x17   : > { %v1235_v27 = vld [vmem:[%s1720_s1 + $0xc0] ss:$16 sps:$4 sm:$0xff]   ;;  %v1236_v28 = vld [vmem:[%s1720_s1 + $0xc8] ss:$16 sps:$4 sm:$0xff]   ;;  %s223_s23 = scalar_lea.vmem %s1719_s0, %s1038_s7  ;;  %v1237_v29 = vld [vmem:[%s1720_s1 + $0xe4] ss:$16 sps:$4 sm:$0xff]  }
  0x18   : > { %449 = vmatpush1.bf16.msra.mxu0 %v1211_v11  ;;  %492 = vmatpush1.bf16.msra.mxu1 %v1212_v12  ;;  %v1239_v30 = vld [vmem:[%s1720_s1 + $0xec] ss:$16 sps:$4 sm:$0xff]   ;;  %v1241_v31 = vld [vmem:[%s1720_s1 + $0xe0] ss:$16 sps:$4 sm:$0xff]   ;;  %v1242_v32 = vld [vmem:[%s1720_s1 + $0xe8] ss:$16 sps:$4 sm:$0xff]  }
  0x19   : > { %450 = vmatprep.subr.bf16.mxu0 %v1213_v13  ;;  %493 = vmatprep.subr.bf16.mxu1 %v1215_v14  ;;  %v1541_v33 = vld [vmem:[%s223_s23] sm:$0xff]  ;;  %v1543_v34 = vld [vmem:[%s223_s23 + $0x8] sm:$0xff]  ;;  %v1251_v44 = vld [vmem:[%s1722_s3 + $0x50] sm:$0xff]   ;;  %v266_v6 = vsub.s32 0, %v1643_v5  ;;  %v274_v7 = vsub.s32 2, %v1643_v5  ;;  %v270_v9 = vsub.s32 1, %v1643_v5 }
  0x1a   : > { %v1243_v35 = vld [vmem:[%s1722_s3 + $0x40] sm:$0xff]   ;;  %v229_v39 = vpack.c.bf16 %v1543_v34, %v1541_v33  ;;  %v1247_v40 = vld [vmem:[%s1722_s3 + $0x48] sm:$0xff]   ;;  %v1252_v45 = vld [vmem:[%s1722_s3 + $0xd0] sm:$0xff]   ;;  %v278_v10 = vsub.s32 3, %v1643_v5  ;;  %s1036_s16 = sshll.u32 %s216_s15, 4  ;;  %s1108_s17 = sshll.u32 %s1414_s22, 8 }
  0x1b   : > { %v1244_v36 = vld [vmem:[%s1722_s3 + $0xc0] sm:$0xff]   ;;  %v1248_v41 = vld [vmem:[%s1722_s3 + $0xc8] sm:$0xff]   ;;  %v1253_v46 = vld [vmem:[%s1722_s3 + $0x10] sm:$0xff]   ;;  %s218_s25 = scalar_lea.vmem [#allocation2], %s1036_s16  ;;  %s1674_s6 = scalar_lea.hbm %s1724_s5, %s1108_s17 }
  0x1c   : > { %451 = vmatpush1.bf16.msra.mxu0 %v1217_v15  ;;  %494 = vmatpush1.bf16.msra.mxu1 %v1218_v16  ;;  %v1245_v37 = vld [vmem:[%s1722_s3] sm:$0xff]   ;;  %v1249_v42 = vld [vmem:[%s1722_s3 + $0x8] sm:$0xff]   ;;  %v1254_v47 = vld [vmem:[%s1722_s3 + $0x90] sm:$0xff]   ;;  %s970_s23 = sshll.u32 %s218_s25, 4  ;;  %s1678_s8 = scalar_lea.sflag [#allocation3], %s216_s15  ;;  %s1676_s23 = int_to_ptr.vmem [resolvable:$true] %s970_s23 }
  0x1d   : > { %452 = vmatprep.subr.bf16.mxu0 %v1219_v17  ;;  %495 = vmatprep.subr.bf16.mxu1 %v1221_v18  ;;  %v1246_v38 = vld [vmem:[%s1722_s3 + $0x80] sm:$0xff]   ;;  %v1250_v43 = vld [vmem:[%s1722_s3 + $0x88] sm:$0xff]   ;;  %v1255_v48 = vld [vmem:[%s1722_s3 + $0x58] sm:$0xff]   ;;  %s1295_s9 = scalar_lea.vmem %s1676_s23, 256  ;;  %s1360_s22 = smov [#allocation2]  }
  0x1e   : > { %v1256_v49 = vld [vmem:[%s1722_s3 + $0xd8] sm:$0xff]   ;;  %v1259_v52 = vld [vmem:[%s1722_s3 + $0x60] sm:$0xff]   ;;  %v1263_v56 = vld [vmem:[%s1722_s3 + $0x68] sm:$0xff]   ;;  %p1296_p11 = scmp.ne.s32.totalorder %s1676_s23, %s1295_s9  ;;  %s1299_s10 = sshll.u32 %s1360_s22, 4  ;;  %s1300_s10 = int_to_ptr.vmem [resolvable:$false] %s1299_s10 }
  0x1f   : > { %v1257_v50 = vld [vmem:[%s1722_s3 + $0x18] sm:$0xff]   ;;  %v1260_v53 = vld [vmem:[%s1722_s3 + $0xe0] sm:$0xff]   ;;  %v1264_v57 = vld [vmem:[%s1722_s3 + $0xe8] sm:$0xff]   ;;  %s1301_s11 = scalar_lea.vmem %s1300_s10, 512  ;;  %p1302_p0 = scmp.lt.s32.totalorder %s1676_s23, %s1300_s10 }
  0x20   : > { %453 = vmatpush1.bf16.msra.mxu0 %v1223_v19  ;;  %496 = vmatpush1.bf16.msra.mxu1 %v1224_v20  ;;  %v1258_v51 = vld [vmem:[%s1722_s3 + $0x98] sm:$0xff]   ;;  %v1261_v54 = vld [vmem:[%s1722_s3 + $0x20] sm:$0xff]   ;;  %v1265_v58 = vld [vmem:[%s1722_s3 + $0x28] sm:$0xff]   ;;  %p1297_p12 = pnand %p1296_p11, %p1431_p5  ;;  %p1303_p1 = scmp.lt.s32.totalorder %s1301_s11, %s1295_s9 }
  0x21   : > { %454 = vmatprep.subr.bf16.mxu0 %v1225_v21  ;;  %497 = vmatprep.subr.bf16.mxu1 %v1227_v22  ;;  %v1262_v55 = vld [vmem:[%s1722_s3 + $0xa0] sm:$0xff]   ;;  %v1266_v59 = vld [vmem:[%s1722_s3 + $0xa8] sm:$0xff]   ;;  %v1267_v60 = vld [vmem:[%s1722_s3 + $0x70] sm:$0xff]  }
  0x22   : > { %v1268_v61 = vld [vmem:[%s1722_s3 + $0xf0] sm:$0xff]   ;;  %v1271_v0 = vld [vmem:[%s1722_s3 + $0x78] sm:$0xff]   ;;  %v262_v8 = vld [vmem:[%s1721_s2] sm:$0xf]  ;;  %p1298_p13 = pneg %p1297_p12  ;;  %p1304_p2 = por %p1303_p1, %p1302_p0 }
  0x23   : > { %v1269_v62 = vld [vmem:[%s1722_s3 + $0x30] sm:$0xff]   ;;  %v1272_v1 = vld [vmem:[%s1722_s3 + $0xf8] sm:$0xff]   ;;  %v267_v11 = vrot.slane %v262_v8, %v266_v6  ;;  %v275_v12 = vrot.slane %v262_v8, %v274_v7  ;;  %v271_v13 = vrot.slane %v262_v8, %v270_v9  ;;  %v279_v14 = vrot.slane %v262_v8, %v278_v10 }
  0x24   : > { %455 = vmatpush1.bf16.msra.mxu0 %v1229_v23  ;;  %498 = vmatpush1.bf16.msra.mxu1 %v1230_v24  ;;  %v1270_v63 = vld [vmem:[%s1722_s3 + $0xb0] sm:$0xff]   ;;  %v1273_v2 = vld [vmem:[%s1722_s3 + $0x38] sm:$0xff]   ;;  %p1305_p3 = pnand %p1304_p2, %p1298_p13 }
  0x25   : > { %456 = vmatprep.subr.bf16.mxu0 %v1231_v25  ;;  %499 = vmatprep.subr.bf16.mxu1 %v1233_v26  ;;  %v1274_v3 = vld [vmem:[%s1722_s3 + $0xb8] sm:$0xff]  }
  0x28   : > { %457 = vmatpush1.bf16.msra.mxu0 %v1235_v27  ;;  %500 = vmatpush1.bf16.msra.mxu1 %v1236_v28 }
  0x29   : > { %458 = vmatprep.subr.bf16.mxu0 %v1237_v29  ;;  %501 = vmatprep.subr.bf16.mxu1 %v1239_v30 }
  0x2c   : > { %459 = vmatpush1.bf16.msra.mxu0 %v1241_v31  ;;  %502 = vmatpush1.bf16.msra.mxu1 %v1242_v32 }
  0x2d   : > { %1109 = vmatprep.subr.bf16.mxu0 %v1243_v35  ;;  %1131 = vmatprep.subr.bf16.mxu1 %v1244_v36 }
  0x2f   : > { %477 = vmatmul.mubr.bf16.vlgmr.msra.gmra.mrb[0].mxu0 %v229_v39  ;;  %520 = vmatmul.mubr.bf16.vlgmr.msra.gmra.mrb[0].mxu1 %v229_v39 }
  0x30   : > { %1110 = vmatpush3.bf16.msra.mxu0 %v1245_v37  ;;  %1132 = vmatpush3.bf16.msra.mxu1 %v1246_v38 }
  0x31   : > { %1111 = vmatprep.subr.bf16.mxu0 %v1247_v40  ;;  %1133 = vmatprep.subr.bf16.mxu1 %v1248_v41 }
  0x34   : > { %1112 = vmatpush3.bf16.msra.mxu0 %v1249_v42  ;;  %1134 = vmatpush3.bf16.msra.mxu1 %v1250_v43 }
  0x35   : > { %1113 = vmatprep.subr.bf16.mxu0 %v1251_v44  ;;  %1135 = vmatprep.subr.bf16.mxu1 %v1252_v45 }
  0x38   : > { %1114 = vmatpush3.bf16.msra.mxu0 %v1253_v46  ;;  %1136 = vmatpush3.bf16.msra.mxu1 %v1254_v47 }
  0x39   : > { %1115 = vmatprep.subr.bf16.mxu0 %v1255_v48  ;;  %1137 = vmatprep.subr.bf16.mxu1 %v1256_v49 }
  0x3c   : > { %1116 = vmatpush3.bf16.msra.mxu0 %v1257_v50  ;;  %1138 = vmatpush3.bf16.msra.mxu1 %v1258_v51 }
  0x3d   : > { %1117 = vmatprep.subr.bf16.mxu0 %v1259_v52  ;;  %1139 = vmatprep.subr.bf16.mxu1 %v1260_v53 }
  0x40   : > { %1118 = vmatpush3.bf16.msra.mxu0 %v1261_v54  ;;  %1140 = vmatpush3.bf16.msra.mxu1 %v1262_v55 }
  0x41   : > { %1119 = vmatprep.subr.bf16.mxu0 %v1263_v56  ;;  %1141 = vmatprep.subr.bf16.mxu1 %v1264_v57 }
  0x44   : > { %1120 = vmatpush3.bf16.msra.mxu0 %v1265_v58  ;;  %1142 = vmatpush3.bf16.msra.mxu1 %v1266_v59 }
  0x45   : > { %1121 = vmatprep.subr.bf16.mxu0 %v1267_v60  ;;  %1143 = vmatprep.subr.bf16.mxu1 %v1268_v61 }
  0x48   : > { %1122 = vmatpush3.bf16.msra.mxu0 %v1269_v62  ;;  %1144 = vmatpush3.bf16.msra.mxu1 %v1270_v63 }
  0x49   : > { %1123 = vmatprep.subr.bf16.mxu0 %v1271_v0  ;;  %1145 = vmatprep.subr.bf16.mxu1 %v1272_v1 }
  0x4c   : > { %1124 = vmatpush3.bf16.msra.mxu0 %v1273_v2  ;;  %1146 = vmatpush3.bf16.msra.mxu1 %v1274_v3 }
 0x102   : > { %v478_v15 = vpop.f32.mrb[0].mxu0  ;;  %v521_v16 = vpop.f32.mrb[0].mxu1 }
 0x103   : > { %v479_v17 = vadd.f32 %v478_v15, %v267_v11  ;;  %v522_v18 = vadd.f32 %v521_v16, %v275_v12  ;;  %v480_v19 = vpop.f32.mrb[1].mxu0  ;;  %v523_v20 = vpop.f32.mrb[1].mxu1 }
 0x104   : > { %v481_v21 = vadd.f32 %v480_v19, %v271_v13  ;;  %v524_v22 = vadd.f32 %v523_v20, %v279_v14  ;;  %v482_v23 = vpop.f32.mrb[2].mxu0  ;;  %v525_v24 = vpop.f32.mrb[2].mxu1 }
 0x105   : > { %v538_v25 = vmul.f32 0.70710677, %v479_v17  ;;  %v540_v26 = vmul.f32 0.70710677, %v522_v18  ;;  %v483_v29 = vadd.f32 %v482_v23, %v267_v11  ;;  %v526_v30 = vadd.f32 %v525_v24, %v275_v12  ;;  %v484_v31 = vpop.f32.mrb[3].mxu0  ;;  %v527_v32 = vpop.f32.mrb[3].mxu1 }
 0x106   : > { %v539_v27 = vmul.f32 0.70710677, %v481_v21  ;;  %v541_v28 = vmul.f32 0.70710677, %v524_v22  ;;  %v485_v35 = vadd.f32 %v484_v31, %v271_v13  ;;  %v528_v36 = vadd.f32 %v527_v32, %v279_v14 }
 0x107   : > { %1275 = verf.f32 %v538_v25  ;;  %v542_v37 = vmul.f32 0.70710677, %v483_v29  ;;  %v544_v38 = vmul.f32 0.70710677, %v526_v30  ;;  %v530_v47 = vmul.f32 0.5, %v479_v17 }
 0x108   : > { %1277 = verf.f32 %v540_v26  ;;  %v543_v39 = vmul.f32 0.70710677, %v485_v35  ;;  %v545_v40 = vmul.f32 0.70710677, %v528_v36  ;;  %v532_v48 = vmul.f32 0.5, %v522_v18 }
 0x109   : > { %1279 = verf.f32 %v539_v27  ;;  %v531_v51 = vmul.f32 0.5, %v481_v21  ;;  %v534_v53 = vmul.f32 0.5, %v483_v29  ;;  %v533_v56 = vmul.f32 0.5, %v524_v22  ;;  %v638_v17 = vld [vmem:[%s1723_s4] sm:$0x7] }
 0x10a   : > { %1281 = verf.f32 %v541_v28  ;;  %v536_v58 = vmul.f32 0.5, %v526_v30  ;;  %v535_v63 = vmul.f32 0.5, %v485_v35  ;;  %v537_v3 = vmul.f32 0.5, %v528_v36 }
 0x10b   : > { %1283 = verf.f32 %v542_v37  ;;  %v642_v19 = vrot.slane %v638_v17, %v266_v6 }
 0x10c   : > { %1285 = verf.f32 %v544_v38 }
 0x10d   : > { %1287 = verf.f32 %v543_v39 }
 0x10e   : > { %1289 = verf.f32 %v545_v40 }
 0x111   : > { %v1276_v41 = vpop.eup %1275 }
 0x112   : > { %v1278_v42 = vpop.eup %1277  ;;  %v554_v45 = vadd.f32 1.0, %v1276_v41 }
 0x113   : > { %v1280_v43 = vpop.eup %1279  ;;  %v556_v49 = vadd.f32 1.0, %v1278_v42 }
 0x114   : > { %v1282_v44 = vpop.eup %1281  ;;  %v555_v52 = vadd.f32 1.0, %v1280_v43  ;;  %v562_v61 = vmul.f32 %v554_v45, %v530_v47 }
 0x115   : > { %v1284_v46 = vpop.eup %1283  ;;  %v557_v57 = vadd.f32 1.0, %v1282_v44  ;;  %v564_v1 = vmul.f32 %v556_v49, %v532_v48 }
 0x116   : > { %v1286_v50 = vpop.eup %1285  ;;  %v558_v54 = vadd.f32 1.0, %v1284_v46  ;;  %v563_v8 = vmul.f32 %v555_v52, %v531_v51  ;;  %v951_v52 = vrot.slane %v638_v17, %v274_v7 }
 0x117   : > { %v1288_v55 = vpop.eup %1287  ;;  %v560_v59 = vadd.f32 1.0, %v1286_v50  ;;  %v565_v12 = vmul.f32 %v557_v57, %v533_v56  ;;  %v945_v50 = vrot.slane %v638_v17, %v270_v9 }
 0x118   : > { %v1290_v60 = vpop.eup %1289  ;;  %v566_v62 = vmul.f32 %v558_v54, %v534_v53  ;;  %v559_v0 = vadd.f32 1.0, %v1288_v55 }
 0x119   : > { %v568_v2 = vmul.f32 %v560_v59, %v536_v58  ;;  %v561_v4 = vadd.f32 1.0, %v1290_v60 }
 0x11a   : > { %v570_v10 = vpack.c.bf16 %v566_v62, %v562_v61  ;;  %v567_v11 = vmul.f32 %v559_v0, %v535_v63 }
 0x11b   : > { %v572_v13 = vpack.c.bf16 %v568_v2, %v564_v1  ;;  %v569_v14 = vmul.f32 %v561_v4, %v537_v3 }
 0x11c   : > { %v571_v15 = vpack.c.bf16 %v567_v11, %v563_v8 }
 0x11d   : > { %v573_v16 = vpack.c.bf16 %v569_v14, %v565_v12 }
 0x11e   : > { %867 = vmatprep.mubr.bf16.mxu0 %v571_v15 }
 0x11f   : > { %908 = vmatprep.mubr.bf16.mxu1 %v573_v16  ;;  %868 = vmatmul.mubr.bf16.vlgmr.msra.gmra.mrb[4].mxu0 %v570_v10 }
 0x120   : > { %909 = vmatmul.mubr.bf16.vlgmr.msra.gmra.mrb[4].mxu1 %v572_v13 }
 0x1f2   : > { %v1125_v18 = vpop.f32.mrb[4].mxu0 }
 0x1f3   : > { %v1147_v20 = vpop.f32.mrb[4].mxu1  ;;  %v1126_v21 = vpop.f32.mrb[5].mxu0 }
 0x1f4   : > { %v1127_v22 = vadd.f32 %v1126_v21, %v1125_v18  ;;  %v1148_v23 = vpop.f32.mrb[5].mxu1  ;;  %v1128_v24 = vpop.f32.mrb[6].mxu0 }
 0x1f5   : > { %v1149_v25 = vadd.f32 %v1148_v23, %v1147_v20  ;;  %v1150_v26 = vpop.f32.mrb[6].mxu1  ;;  %v1129_v27 = vpop.f32.mrb[7].mxu0 }
 0x1f6   : > { %v870_v28 = vadd.f32 %v1127_v22, %v642_v19  ;;  %v1130_v29 = vadd.f32 %v1129_v27, %v1128_v24  ;;  %v1151_v30 = vpop.f32.mrb[7].mxu1 }
 0x1f7   : > { %v1152_v31 = vadd.f32 %v1151_v30, %v1150_v26 }
 0x1f8   : > { %v911_v32 = vadd.f32 %v1149_v25, %v870_v28  ;;  %v873_v35 = vadd.f32 %v1130_v29, %v642_v19 }
 0x1fa   : > { %v914_v36 = vadd.f32 %v1152_v31, %v873_v35  ;;  %v917_v37 = vadd.f32 %v911_v32, %v1541_v33 }
 0x1fc   : > { %919 = vadd.xlane.f32.xlu0 %v917_v37  ;;  %v918_v6 = vadd.f32 %v914_v36, %v1543_v34 }
 0x200   : > { %921 = vadd.xlane.f32.xlu0 %v918_v6 }
 0x289   : > { %v920_v38 = vpop.xlane.xlu0 %919 }
 0x28a   : > { %v924_v39 = vmul.f32 0.0078125, %v920_v38 }
 0x28c   : > { %v926_v40 = vsub.f32 %v917_v37, %v924_v39 }
 0x28d   : > { %v922_v41 = vpop.xlane.xlu0 %921 }
 0x28e   : > { %v925_v42 = vmul.f32 0.0078125, %v922_v41  ;;  %v928_v43 = vmul.f32 %v926_v40, %v926_v40 }
 0x290   : > { %v927_v44 = vsub.f32 %v918_v6, %v925_v42  ;;  %930 = vadd.xlane.f32.xlu1 %v928_v43 }
 0x292   : > { %v929_v45 = vmul.f32 %v927_v44, %v927_v44 }
 0x294   : > { %932 = vadd.xlane.f32.xlu1 %v929_v45 }
 0x31d   : > { %v931_v46 = vpop.xlane.xlu1 %930 }
 0x31e   : > { %v934_v47 = vmul.f32 0.0078125, %v931_v46 }
 0x320   : > { %v936_v48 = vadd.f32 1e-05, %v934_v47 }
 0x321   : > { %v933_v33 = vpop.xlane.xlu1 %932 }
 0x322   : > { %1291 = vrsqrt.f32 %v936_v48  ;;  %v935_v49 = vmul.f32 0.0078125, %v933_v33 }
 0x324   : > { %v937_v34 = vadd.f32 1e-05, %v935_v49 }
 0x326   : > { %1293 = vrsqrt.f32 %v937_v34 }
 0x32c   : > { %v1292_v51 = vpop.eup %1291 }
 0x32d   : > { %v940_v53 = vmul.f32 %v1292_v51, %v926_v40 }
 0x32f   : > { %v946_v54 = vmul.f32 %v945_v50, %v940_v53 }
 0x330   : > { %v1294_v55 = vpop.eup %1293 }
 0x331   : > { %v941_v56 = vmul.f32 %v1294_v55, %v927_v44  ;;  %v952_v57 = vadd.f32 %v951_v52, %v946_v54 }
 0x333   : > { %v947_v58 = vmul.f32 %v945_v50, %v941_v56  ;;  %954 = vst [vmem:[%s218_s25] sm:$0xff] %v952_v57 }
 0x335   : > { %v953_v5 = vadd.f32 %v951_v52, %v947_v58 }
 0x337   : > { %955 = vst [vmem:[%s218_s25 + $0x8] sm:$0xff] %v953_v5 }
 0x338   : > { %1308 = shalt.err (!%p1305_p3)
}
 0x339   : > { %s1309_s7 = scalar_lea.hbm %s1674_s6, 256  ;;  %s1313_s14 = scalar_lea.hbm %s1724_s5, 512 }
 0x33a   : > { %p1310_p4 = scmp.ne.s32.totalorder %s1674_s6, %s1309_s7  ;;  %p1314_p9 = scmp.lt.u32.totalorder %s1674_s6, %s1724_s5 }
 0x33b   : > { %p1315_p10 = scmp.lt.u32.totalorder %s1313_s14, %s1309_s7  ;;  %p1317_p12 = scmp.lt.u32.totalorder %s1309_s7, %s1674_s6 }
 0x33c   : > { %p1311_p7 = pnand %p1310_p4, %p1431_p5 }
 0x33d   : > { %p1316_p11 = por %p1315_p10, %p1314_p9 }
 0x33e   : > { %p1312_p8 = pneg %p1311_p7 }
 0x33f   : > { %p1318_p13 = por %p1317_p12, %p1316_p11 }
 0x341   : > { %p1319_p0 = pnand %p1318_p13, %p1312_p8 }
 0x343   : > { %1322 = shalt.err (!%p1319_p0)
}
 0x344   : > { %s1361_s17 = smov 128   ;;  %s1362_s25 = smov 8  }
 0x345   : > { %1153 = dma.vmem_to_hbm [thread:$0]  (%p1431_p5), %s1676_s23, 256, %s1674_s6, %s1678_s8, %s1361_s17, %s1361_s17, %s1362_s25  }
 0x346 PF: > { %p1159_p1 = scmp.ge.s32.totalorder %s1357_s21, 2  ;;  %s985_s26 = sand.u32 1, %s1345_s18  }
 0x347   : > { %s986_s30 = scalar_lea.sflag [#allocation3], %s985_s26 }
 0x348   : > { %p1156_p2 = pnand %p1159_p1, %p1435_p6 }
 0x34a   : > { %1340 = dma.done.wait (!%p1156_p2), %s986_s30, 256  }
 0x34b   : > { %1342 = vsyncadd (!%p1156_p2), %s986_s30, 4294967040  ;;  %p15_p3 = scmp.ge.s32.totalorder %s1418_s24, 4   ;;  %s1727_s18 = smov %s1349_s19 }
 0x34c   : > { %s1728_s19 = smov %s1353_s20  ;;  %s1729_s20 = smov %s1429_s27 }
 0x34d   : > { %s1730_s21 = smov %s1418_s24  ;;  %17 = sbr.rel (!%p15_p3) target bundleno = 3 (0x3), region = 75 }
 0x354   :  { %991 = vsyncpa [#allocation3], 1 }
 0x355   :  { %993 = vsyncpa [#allocation3 + $0x1], 1 }

</bundles_post_ra>
